<compile_context>
chip_gen: v5e
topology: v5e:2x2
jax: 0.10.0
libtpu: 0.0.40
codegen_flags: <defaults>
</compile_context>

<pallas_src>
import functools

import jax
import jax.numpy as jnp
from jax.experimental import pallas as pl
from jax.experimental.pallas import tpu as pltpu

LANE = 128


# --------------------------------------------------------------------------- #
# Parameters (same layout as the PyTorch module; Linear weights stored (in, out))
# --------------------------------------------------------------------------- #
def init_params(key, input_dim, output_dim, hidden_dim, dtype=jnp.float32):
    ks = jax.random.split(key, 16)

    def rnd(k, shape, scale):
        return (jax.random.normal(k, shape, dtype=jnp.float32) * scale).astype(dtype)

    H = hidden_dim
    return {
        # Dense_0 : nn.Linear(input_dim, H)
        "W0": rnd(ks[0], (input_dim, H), 0.1), "b0": rnd(ks[9], (H,), 0.1),
        # GRUCell(H, H)
        "W_z": rnd(ks[1], (H, H), 0.01), "U_z": rnd(ks[2], (H, H), 0.01),
        "b_z": rnd(ks[10], (H,), 0.01),
        "W_r": rnd(ks[3], (H, H), 0.01), "U_r": rnd(ks[4], (H, H), 0.01),
        "b_r": rnd(ks[11], (H,), 0.01),
        "W_h": rnd(ks[5], (H, H), 0.01), "U_h": rnd(ks[6], (H, H), 0.01),
        "b_ih": rnd(ks[12], (H,), 0.01), "b_hh": rnd(ks[13], (H,), 0.01),
        # Dense_1 : nn.Linear(H, H)
        "W1": rnd(ks[7], (H, H), 0.1), "b1": rnd(ks[14], (H,), 0.1),
        # Dense_2 : nn.Linear(H, output_dim)
        "W2": rnd(ks[8], (H, output_dim), 0.1), "b2": rnd(ks[15], (output_dim,), 0.1),
    }


# --------------------------------------------------------------------------- #
# Host-side packing: ONE slab holding every weight and bias.
#
#   rows 0:2H          weight rows
#   rows 2H:2H+8       bias rows (one bias per sublane)
#
#   lanes [0,   128) : block-diagonal [[W0, 0], [0, U_r|U_z|U_h]]   (2H x 128)
#   lanes [128, 256) : fused x-path gates [W_r|W_z|W_h]             (H  x 3H)
#   lanes [256, 384) : W1                                           (H  x H)
#   lanes [384, 512) : W2 padded to out_pad = 128 - H lanes          (H  x out_pad)
# --------------------------------------------------------------------------- #
def pack_params(params, input_dim, hidden_dim, output_dim):
    H = hidden_dim
    out_pad = LANE - H
    assert H % 8 == 0 and input_dim <= H
    assert 4 * H <= LANE            # block-diag result [e_pre | gh] fits one lane tile
    assert output_dim <= out_pad    # packed [out | h'] output fits one lane tile

    f32 = jnp.float32
    W0_pad = jnp.zeros((H, H), f32).at[:input_dim, :].set(params["W0"].astype(f32))
    Wg = jnp.concatenate([params["W_r"], params["W_z"], params["W_h"]], axis=1)
    Ug = jnp.concatenate([params["U_r"], params["U_z"], params["U_h"]], axis=1)
    W2_pad = jnp.zeros((H, out_pad), f32).at[:, :output_dim].set(params["W2"].astype(f32))

    rows = 2 * H + 8
    slab = jnp.zeros((rows, 4 * LANE), f32)
    # block-diagonal [x|h] weight
    slab = slab.at[0:H, 0:H].set(W0_pad)
    slab = slab.at[H:2 * H, H:4 * H].set(Ug.astype(f32))
    # remaining weights (rows 0:H)
    slab = slab.at[0:H, LANE:LANE + 3 * H].set(Wg.astype(f32))
    slab = slab.at[0:H, 2 * LANE:2 * LANE + H].set(params["W1"].astype(f32))
    slab = slab.at[0:H, 3 * LANE:3 * LANE + out_pad].set(W2_pad)

    # bias rows (sublanes 2H .. 2H+7)
    bx3 = jnp.concatenate([params["b_r"], params["b_z"], params["b_ih"]]).astype(f32)
    bh3 = jnp.concatenate([jnp.zeros((2 * H,), f32), params["b_hh"].astype(f32)])
    b2_pad = jnp.zeros((out_pad,), f32).at[:output_dim].set(params["b2"].astype(f32))
    br = 2 * H
    slab = slab.at[br + 0, 0:H].set(params["b0"].astype(f32))
    slab = slab.at[br + 1, 0:3 * H].set(bx3)
    slab = slab.at[br + 2, 0:3 * H].set(bh3)
    slab = slab.at[br + 3, 0:H].set(params["b1"].astype(f32))
    slab = slab.at[br + 4, 0:out_pad].set(b2_pad)
    return slab


# --------------------------------------------------------------------------- #
# Pallas kernel + wrappers
# --------------------------------------------------------------------------- #
def rnn_actor_mappo_sequence(w_slab, x_seq, h0, *, input_dim, hidden_dim, output_dim):
    """x_seq: (T, B, input_dim), h0: (B, H) -> (y: (T, B, output_dim), h_T: (B, H))."""
    T, B, _ = x_seq.shape
    H = hidden_dim
    out_pad = LANE - H

    # Pad observations once for the whole sequence (zero rows in W0_pad make it exact).
    if input_dim < H:
        x_seq = jnp.pad(x_seq, ((0, 0), (0, 0), (0, H - input_dim)))

    def kernel(x_ref, h0_ref, w_ref, out_ref, h_scr):
        t = pl.program_id(0)

        @pl.when(t == 0)
        def _():
            h_scr[...] = h0_ref[...]

        h_prev = h_scr[...]                       # (B, H) carried hidden state
        x_t = x_ref[0]                            # (B, H) padded observation

        bias = w_ref[2 * H:2 * H + 8, :LANE]      # (8, 128) bias tile
        b0 = bias[0:1, :H]
        bx3 = bias[1:2, :3 * H]
        bh3 = bias[2:3, :3 * H]
        b1 = bias[3:4, :H]
        b2 = bias[4:5, :out_pad]

        # MXU 1 (block-diagonal): [x | h] @ [[W0,0],[0,Ug]] -> [e_pre | gh] in 128 lanes.
        lhs = jnp.concatenate([x_t, h_prev], axis=-1)                      # (B, 2H)
        fused = jnp.dot(lhs, w_ref[0:2 * H, 0:LANE],
                        preferred_element_type=jnp.float32)                # (B, 128)
        e = jnp.maximum(fused[:, :H] + b0, 0.0)                            # Dense_0 -> ReLU
        gh = fused[:, H:H + 3 * H] + bh3                                   # h-path gates (+[0|0|b_hh])

        # MXU 2: fused x-path gates.
        gx = jnp.dot(e, w_ref[0:H, LANE:LANE + 3 * H],
                     preferred_element_type=jnp.float32) + bx3             # (+[b_r|b_z|b_ih])

        # One sigmoid over the r|z lanes, split afterwards.
        g = gx + gh
        rz = jax.nn.sigmoid(g[:, :2 * H])
        r = rz[:, :H]
        z = rz[:, H:2 * H]
        h_tilde = jnp.tanh(gx[:, 2 * H:3 * H] + r * gh[:, 2 * H:3 * H])
        h_t = (1.0 - z) * h_tilde + z * h_prev

        # MXU 3 + 4: Dense_1 -> ReLU -> Dense_2 (padded to out_pad lanes).
        emb = jnp.maximum(
            jnp.dot(h_t, w_ref[0:H, 2 * LANE:2 * LANE + H],
                    preferred_element_type=jnp.float32) + b1, 0.0)
        out96 = jnp.dot(emb, w_ref[0:H, 3 * LANE:3 * LANE + out_pad],
                        preferred_element_type=jnp.float32) + b2

        h_scr[...] = h_t
        # Single lane-dense (B, 128) store: [out_pad lanes | h'].
        out_ref[0] = jnp.concatenate([out96, h_t], axis=-1).astype(out_ref.dtype)

    packed = pl.pallas_call(
        kernel,
        out_shape=jax.ShapeDtypeStruct((T, B, LANE), jnp.float32),
        grid_spec=pltpu.PrefetchScalarGridSpec(
            num_scalar_prefetch=0,
            grid=(T,),
            in_specs=[
                pl.BlockSpec((1, B, H), lambda t: (t, 0, 0)),        # x_t streamed per step
                pl.BlockSpec((B, H), lambda t: (0, 0)),              # h0, DMA'd once
                pl.BlockSpec(w_slab.shape, lambda t: (0, 0)),        # weights+biases, resident
            ],
            out_specs=pl.BlockSpec((1, B, LANE), lambda t: (t, 0, 0)),
            scratch_shapes=[pltpu.VMEM((B, H), jnp.float32)],        # carried hidden state
        ),
        compiler_params=pltpu.CompilerParams(
            dimension_semantics=("arbitrary",)),                     # sequential carry over T
    )(x_seq, h0, w_slab)

    # Slice the packed output once per sequence (not per step).
    y = packed[:, :, :output_dim]
    h_final = packed[T - 1, :, out_pad:]
    return y, h_final


def rnn_actor_mappo_step(w_slab, x, h, *, input_dim, hidden_dim, output_dim):
    """Single-step interface matching the PyTorch module's forward(x, h) -> (y, h')."""
    y, h_new = rnn_actor_mappo_sequence(
        w_slab, x[None], h,
        input_dim=input_dim, hidden_dim=hidden_dim, output_dim=output_dim)
    return y[0], h_new


# --------------------------------------------------------------------------- #
# Pure-JAX reference (unfused, matches the PyTorch module exactly)
# --------------------------------------------------------------------------- #
def _reference_step(params, x, h):
    e = jnp.maximum(x @ params["W0"] + params["b0"], 0.0)
    r = jax.nn.sigmoid(e @ params["W_r"] + h @ params["U_r"] + params["b_r"])
    z = jax.nn.sigmoid(e @ params["W_z"] + h @ params["U_z"] + params["b_z"])
    h_tilde = jnp.tanh(e @ params["W_h"] + params["b_ih"]
                       + r * (h @ params["U_h"] + params["b_hh"]))
    h_t = (1.0 - z) * h_tilde + z * h
    emb = jnp.maximum(h_t @ params["W1"] + params["b1"], 0.0)
    out = emb @ params["W2"] + params["b2"]
    return out, h_t


def _reference_sequence(params, x_seq, h0):
    def body(h, x):
        y, h2 = _reference_step(params, x, h)
        return h2, y
    h_final, ys = jax.lax.scan(body, h0, x_seq)
    return ys, h_final


if __name__ == "__main__":
    T, B, INPUT_DIM, HIDDEN_DIM, OUTPUT_DIM = 8, 8, 24, 32, 8

    key = jax.random.PRNGKey(0)
    k_param, k_x, k_h = jax.random.split(key, 3)

    params = init_params(k_param, INPUT_DIM, OUTPUT_DIM, HIDDEN_DIM)
    w_slab = pack_params(params, INPUT_DIM, HIDDEN_DIM, OUTPUT_DIM)

    x_seq = jax.random.normal(k_x, (T, B, INPUT_DIM), dtype=jnp.float32)
    h0 = jax.random.normal(k_h, (B, HIDDEN_DIM), dtype=jnp.float32)

    fwd_seq = jax.jit(functools.partial(
        rnn_actor_mappo_sequence, input_dim=INPUT_DIM, hidden_dim=HIDDEN_DIM,
        output_dim=OUTPUT_DIM))
    fwd_step = jax.jit(functools.partial(
        rnn_actor_mappo_step, input_dim=INPUT_DIM, hidden_dim=HIDDEN_DIM,
        output_dim=OUTPUT_DIM))

    # Full-sequence kernel (time loop inside the kernel, resident weights).
    y_seq, h_T = jax.block_until_ready(fwd_seq(w_slab, x_seq, h0))
    y_ref, h_ref = _reference_sequence(params, x_seq, h0)
    assert jnp.allclose(y_seq, y_ref, atol=1e-4, rtol=1e-4), \
        float(jnp.max(jnp.abs(y_seq - y_ref)))
    assert jnp.allclose(h_T, h_ref, atol=1e-4, rtol=1e-4), \
        float(jnp.max(jnp.abs(h_T - h_ref)))

    # Single-step interface (same kernel, T=1) matches the module forward too.
    y1, h1 = jax.block_until_ready(fwd_step(w_slab, x_seq[0], h0))
    y1_ref, h1_ref = _reference_step(params, x_seq[0], h0)
    assert jnp.allclose(y1, y1_ref, atol=1e-4, rtol=1e-4)
    assert jnp.allclose(h1, h1_ref, atol=1e-4, rtol=1e-4)

    print("KERNEL_OK")
</pallas_src>

<mosaic_0001>
module attributes {stable_mosaic.version = 11 : i64} {
  func.func @kernel(%arg0: i32, %arg1: memref<1x8x32xf32, #tpu.memory_space<vmem>>, %arg2: memref<8x32xf32, #tpu.memory_space<vmem>>, %arg3: memref<72x512xf32, #tpu.memory_space<vmem>>, %arg4: memref<1x8x128xf32, #tpu.memory_space<vmem>>, %arg5: memref<8x32xf32, #tpu.memory_space<vmem>>) attributes {dimension_semantics = [#tpu.dimension_semantics<arbitrary>], iteration_bounds = array<i64: 8>, scalar_prefetch = 0 : i64, scratch_operands = 1 : i64, tpu.core_type = #tpu.core_type<tc>, window_params = [{transform_indices = @transform_0, window_bounds = array<i64: 1, 8, 32>}, {pipeline_mode = #tpu.pipeline_mode<synchronous>, transform_indices = @transform_1, window_bounds = array<i64: 8, 32>}, {pipeline_mode = #tpu.pipeline_mode<synchronous>, transform_indices = @transform_2, window_bounds = array<i64: 72, 512>}, {transform_indices = @transform_3, window_bounds = array<i64: 1, 8, 128>}]} {
    %c0_i32 = arith.constant 0 : i32
    %0 = arith.cmpi eq, %arg0, %c0_i32 : i32
    %1 = arith.extui %0 : i1 to i32
    %c0_i32_0 = arith.constant 0 : i32
    %2 = arith.cmpi ne, %1, %c0_i32_0 : i32
    scf.if %2 {
      %c0_23 = arith.constant 0 : index
      %c0_24 = arith.constant 0 : index
      %61 = vector.load %arg2[%c0_23, %c0_24] : memref<8x32xf32, #tpu.memory_space<vmem>>, vector<8x32xf32>
      %c0_25 = arith.constant 0 : index
      %c0_26 = arith.constant 0 : index
      %62 = vector.load %arg5[%c0_25, %c0_26] : memref<8x32xf32, #tpu.memory_space<vmem>>, vector<8x32xf32>
      tpu.vector_store %arg5[%c0_25, %c0_26], %61 {strides = array<i32>} : memref<8x32xf32, #tpu.memory_space<vmem>>, vector<8x32xf32>,
    } else {
    }
    %c0 = arith.constant 0 : index
    %c0_1 = arith.constant 0 : index
    %3 = vector.load %arg5[%c0, %c0_1] : memref<8x32xf32, #tpu.memory_space<vmem>>, vector<8x32xf32>
    %c0_2 = arith.constant 0 : index
    %c0_3 = arith.constant 0 : index
    %c0_4 = arith.constant 0 : index
    %4 = vector.load %arg1[%c0_2, %c0_3, %c0_4] : memref<1x8x32xf32, #tpu.memory_space<vmem>>, vector<1x8x32xf32>
    %5 = vector.shape_cast %4 : vector<1x8x32xf32> to vector<8x32xf32>
    %c64 = arith.constant 64 : index
    %c0_5 = arith.constant 0 : index
    %6 = vector.load %arg3[%c64, %c0_5] : memref<72x512xf32, #tpu.memory_space<vmem>>, vector<8x128xf32>
    %7 = vector.extract_strided_slice %6 {offsets = [0, 0], sizes = [1, 32], strides = [1, 1]} : vector<8x128xf32> to vector<1x32xf32>
    %8 = vector.extract_strided_slice %6 {offsets = [1, 0], sizes = [1, 96], strides = [1, 1]} : vector<8x128xf32> to vector<1x96xf32>
    %9 = vector.extract_strided_slice %6 {offsets = [2, 0], sizes = [1, 96], strides = [1, 1]} : vector<8x128xf32> to vector<1x96xf32>
    %10 = vector.extract_strided_slice %6 {offsets = [3, 0], sizes = [1, 32], strides = [1, 1]} : vector<8x128xf32> to vector<1x32xf32>
    %11 = vector.extract_strided_slice %6 {offsets = [4, 0], sizes = [1, 96], strides = [1, 1]} : vector<8x128xf32> to vector<1x96xf32>
    %12 = tpu.concatenate %5, %3 in 1 : vector<8x32xf32>, vector<8x32xf32> -> vector<8x64xf32>
    %c0_6 = arith.constant 0 : index
    %c0_7 = arith.constant 0 : index
    %13 = vector.load %arg3[%c0_6, %c0_7] : memref<72x512xf32, #tpu.memory_space<vmem>>, vector<64x128xf32>
    %cst = arith.constant dense<0.000000e+00> : vector<8x128xf32>
    %14 = tpu.matmul %12, %13, %cst {dimension_numbers = #tpu.dot_dimension_numbers<[1], [0], [0], [1], [0, 0, 1, 1], [], []>} : vector<8x64xf32>, vector<64x128xf32>, vector<8x128xf32> -> vector<8x128xf32>
    %15 = vector.extract_strided_slice %14 {offsets = [0, 0], sizes = [8, 32], strides = [1, 1]} : vector<8x128xf32> to vector<8x32xf32>
    %16 = vector.broadcast %7 : vector<1x32xf32> to vector<8x32xf32>
    %17 = arith.addf %15, %16 : vector<8x32xf32>
    %cst_8 = arith.constant 0.000000e+00 : f32
    %18 = vector.broadcast %cst_8 : f32 to vector<8x32xf32>
    %19 = arith.maximumf %17, %18 : vector<8x32xf32>
    %20 = vector.extract_strided_slice %14 {offsets = [0, 32], sizes = [8, 96], strides = [1, 1]} : vector<8x128xf32> to vector<8x96xf32>
    %21 = vector.broadcast %9 : vector<1x96xf32> to vector<8x96xf32>
    %22 = arith.addf %20, %21 : vector<8x96xf32>
    %c0_9 = arith.constant 0 : index
    %c128 = arith.constant 128 : index
    %23 = vector.load %arg3[%c0_9, %c128] : memref<72x512xf32, #tpu.memory_space<vmem>>, vector<32x96xf32>
    %cst_10 = arith.constant dense<0.000000e+00> : vector<8x96xf32>
    %24 = tpu.matmul %19, %23, %cst_10 {dimension_numbers = #tpu.dot_dimension_numbers<[1], [0], [0], [1], [0, 0, 1, 1], [], []>} : vector<8x32xf32>, vector<32x96xf32>, vector<8x96xf32> -> vector<8x96xf32>
    %25 = vector.broadcast %8 : vector<1x96xf32> to vector<8x96xf32>
    %26 = arith.addf %24, %25 : vector<8x96xf32>
    %27 = arith.addf %26, %22 : vector<8x96xf32>
    %28 = vector.extract_strided_slice %27 {offsets = [0, 0], sizes = [8, 64], strides = [1, 1]} : vector<8x96xf32> to vector<8x64xf32>
    %29 = arith.negf %28 : vector<8x64xf32>
    %30 = math.exp %29 : vector<8x64xf32>
    %cst_11 = arith.constant 1.000000e+00 : f32
    %31 = vector.broadcast %cst_11 : f32 to vector<8x64xf32>
    %32 = arith.addf %31, %30 : vector<8x64xf32>
    %33 = arith.divf %31, %32 : vector<8x64xf32>
    %34 = vector.extract_strided_slice %33 {offsets = [0, 0], sizes = [8, 32], strides = [1, 1]} : vector<8x64xf32> to vector<8x32xf32>
    %35 = vector.extract_strided_slice %33 {offsets = [0, 32], sizes = [8, 32], strides = [1, 1]} : vector<8x64xf32> to vector<8x32xf32>
    %36 = vector.extract_strided_slice %26 {offsets = [0, 64], sizes = [8, 32], strides = [1, 1]} : vector<8x96xf32> to vector<8x32xf32>
    %37 = vector.extract_strided_slice %22 {offsets = [0, 64], sizes = [8, 32], strides = [1, 1]} : vector<8x96xf32> to vector<8x32xf32>
    %38 = arith.mulf %34, %37 : vector<8x32xf32>
    %39 = arith.addf %36, %38 : vector<8x32xf32>
    %40 = math.tanh %39 : vector<8x32xf32>
    %cst_12 = arith.constant 1.000000e+00 : f32
    %41 = vector.broadcast %cst_12 : f32 to vector<8x32xf32>
    %42 = arith.subf %41, %35 : vector<8x32xf32>
    %43 = arith.mulf %42, %40 : vector<8x32xf32>
    %44 = arith.mulf %35, %3 : vector<8x32xf32>
    %45 = arith.addf %43, %44 : vector<8x32xf32>
    %c0_13 = arith.constant 0 : index
    %c256 = arith.constant 256 : index
    %46 = vector.load %arg3[%c0_13, %c256] : memref<72x512xf32, #tpu.memory_space<vmem>>, vector<32x32xf32>
    %cst_14 = arith.constant dense<0.000000e+00> : vector<8x32xf32>
    %47 = tpu.matmul %45, %46, %cst_14 {dimension_numbers = #tpu.dot_dimension_numbers<[1], [0], [0], [1], [0, 0, 1, 1], [], []>} : vector<8x32xf32>, vector<32x32xf32>, vector<8x32xf32> -> vector<8x32xf32>
    %48 = vector.broadcast %10 : vector<1x32xf32> to vector<8x32xf32>
    %49 = arith.addf %47, %48 : vector<8x32xf32>
    %cst_15 = arith.constant 0.000000e+00 : f32
    %50 = vector.broadcast %cst_15 : f32 to vector<8x32xf32>
    %51 = arith.maximumf %49, %50 : vector<8x32xf32>
    %c0_16 = arith.constant 0 : index
    %c384 = arith.constant 384 : index
    %52 = vector.load %arg3[%c0_16, %c384] : memref<72x512xf32, #tpu.memory_space<vmem>>, vector<32x96xf32>
    %cst_17 = arith.constant dense<0.000000e+00> : vector<8x96xf32>
    %53 = tpu.matmul %51, %52, %cst_17 {dimension_numbers = #tpu.dot_dimension_numbers<[1], [0], [0], [1], [0, 0, 1, 1], [], []>} : vector<8x32xf32>, vector<32x96xf32>, vector<8x96xf32> -> vector<8x96xf32>
    %54 = vector.broadcast %11 : vector<1x96xf32> to vector<8x96xf32>
    %55 = arith.addf %53, %54 : vector<8x96xf32>
    %c0_18 = arith.constant 0 : index
    %c0_19 = arith.constant 0 : index
    %56 = vector.load %arg5[%c0_18, %c0_19] : memref<8x32xf32, #tpu.memory_space<vmem>>, vector<8x32xf32>
    tpu.vector_store %arg5[%c0_18, %c0_19], %45 {strides = array<i32>} : memref<8x32xf32, #tpu.memory_space<vmem>>, vector<8x32xf32>,
    %57 = tpu.concatenate %55, %45 in 1 : vector<8x96xf32>, vector<8x32xf32> -> vector<8x128xf32>
    %c0_20 = arith.constant 0 : index
    %c0_21 = arith.constant 0 : index
    %c0_22 = arith.constant 0 : index
    %58 = vector.load %arg4[%c0_20, %c0_21, %c0_22] : memref<1x8x128xf32, #tpu.memory_space<vmem>>, vector<1x8x128xf32>
    %59 = vector.shape_cast %58 : vector<1x8x128xf32> to vector<8x128xf32>
    %60 = vector.shape_cast %57 : vector<8x128xf32> to vector<1x8x128xf32>
    tpu.vector_store %arg4[%c0_20, %c0_21, %c0_22], %60 {strides = array<i32>} : memref<1x8x128xf32, #tpu.memory_space<vmem>>, vector<1x8x128xf32>,
    return
  }
  func.func @transform_0(%arg0: i32) -> (i32, i32, i32) {
    %c0_i32 = arith.constant 0 : i32
    %c0_i32_0 = arith.constant 0 : i32
    %c0_i32_1 = arith.constant 0 : i32
    return %arg0, %c0_i32, %c0_i32_0 : i32, i32, i32
  }
  func.func @transform_1(%arg0: i32) -> (i32, i32) {
    %c0_i32 = arith.constant 0 : i32
    %c0_i32_0 = arith.constant 0 : i32
    %c0_i32_1 = arith.constant 0 : i32
    return %c0_i32, %c0_i32_0 : i32, i32
  }
  func.func @transform_2(%arg0: i32) -> (i32, i32) {
    %c0_i32 = arith.constant 0 : i32
    %c0_i32_0 = arith.constant 0 : i32
    %c0_i32_1 = arith.constant 0 : i32
    return %c0_i32, %c0_i32_0 : i32, i32
  }
  func.func @transform_3(%arg0: i32) -> (i32, i32, i32) {
    %c0_i32 = arith.constant 0 : i32
    %c0_i32_0 = arith.constant 0 : i32
    %c0_i32_1 = arith.constant 0 : i32
    return %arg0, %c0_i32, %c0_i32_0 : i32, i32, i32
  }
}

</mosaic_0001>

<bundles_post_ra>
// kernel: rnn_actor_mappo_sequence.1
= control target key start
LH: loop header
LB: loop body
LE: loop exit
PB: predicated region body
PF: predicated region fallthrough
CT: control target
= control target key end

     0   :  { %8 = vsyncpa [#allocation4], 0  ;;  %s557_s12 = smov 0   ;;  %s605_s0 = inlined_call_operand.vmem [shape: f32[8,8,32], index: 0, kind: input, shape index: {}]   ;;  %s606_s1 = inlined_call_operand.vmem [shape: f32[8,32], index: 1, kind: input, shape index: {}]   ;;  %s607_s2 = inlined_call_operand.hbm [shape: f32[72,512], index: 2, kind: input, shape index: {}]   ;;  %s608_s3 = inlined_call_operand.vmem [shape: f32[8,8,128], index: 3, kind: output, shape index: {}]  }
   0x1 LB: > { %s127_s15 = sshll.u32 %s607_s2, 4  ;;  %s442_s16 = sadd.s32 4294967295, %s529_s12   ;;  %s529_s12 = sphi %s557_s12, %s14_s12   ;;  %s128_s15 = int_to_ptr.hbm [resolvable:$true] %s127_s15 }
   0x2   : > { %p444_p0 = scmp.ge.s32.totalorder %s529_s12, 1  ;;  %p113_p1 = scmp.lt.s32.totalorder %s529_s12, 9 }
   0x3   : > { %p445_p2 = scmp.ne.s32.totalorder %s442_s16, 0  ;;  %p467_p3 = scmp.eq.s32.totalorder %s442_s16, 0 }
   0x4   : > { %p114_p4 = pnand %p444_p0, %p113_p1  ;;  %s531_s17 = smov [#allocation3]  }
   0x5   : > { %s129_s18 = sshll.u32 %s531_s17, 4  ;;  %s532_s19 = smov 512   ;;  %s130_s18 = int_to_ptr.vmem [resolvable:$true] %s129_s18 }
   0x6   : > { %p463_p5 = pneg %p114_p4  ;;  %s533_s20 = smov 32  }
   0x7   : > { %152 = sbr.rel (%p114_p4) target bundleno = 1016 (0x3f8), region = 32 }
   0x8   : > { %p464_p6 = pnand %p467_p3, %p463_p5 }
   0xa   : > { %466 = dma.hbm_to_vmem [thread:$0]  (!%p464_p6), %s128_s15, 4608, %s130_s18, [#allocation4], %s532_s19, %s532_s19, %s533_s20  }
   0xc   : > { %524 = dma.done.wait (%p467_p3), [#allocation4], 4608  }
   0xd   : > { %526 = vsyncadd (%p467_p3), [#allocation4], 4294962688  ;;  %p175_p7 = scmp.lt.s32.totalorder %s442_s16, 7 }
   0xe   : > { %186 = sbr.rel (%p445_p2) target bundleno = 21 (0x15), region = 40 }
   0xf   : > { %s176_s21 = scalar_select %p175_p7, %s442_s16, 7 }
  0x11   : > { %s449_s22 = sshll.u32 %s176_s21, 3 }
  0x12   : > { %s571_s25 = scalar_lea.vmem %s605_s0, %s449_s22  ;;  %s576_s28 = scalar_lea.vmem %s608_s3, %s449_s22 }
  0x13   : > { %v187_v0 = vld [vmem:[%s606_s1] sm:$0xff]  ;;  %vm188_vm0 = vcmask 261120  }
  0x14   : > { %189 = vst.msk [vmem:[#allocation2] sm:$0xff] %vm188_vm0, %v187_v0 }
  0x15 PF: > { %v206_v2 = vld [vmem:[#allocation3 + $0xe0] sm:$0xff]  ;;  %s534_s4 = smov 32   ;;  %v243_v11 = vld [vmem:[#allocation3 + $0x68] sm:$0xff]  ;;  %v191_v13 = vld [vmem:[%s571_s25] sm:$0xff]  ;;  %vm197_vm1 = vcmask 261120   ;;  %vm207_vm2 = vcmask 523264  }
  0x16   : > { %v205_v3 = vld [vmem:[#allocation3 + $0xc0] sm:$0xff]  ;;  %219 = vmatpush.msra.mxu0 %v206_v2  ;;  %260 = vmatpush.msra.mxu1 %v243_v11  ;;  %v242_v16 = vld [vmem:[#allocation3 + $0x48] sm:$0xff]  ;;  %s535_s5 = smov 96   ;;  %s536_s6 = smov 64   ;;  %v313_v48 = vld [vmem:[#allocation3 + $0x70] sm:$0xff]  ;;  %vm374_vm7 = vcmask 785408  }
  0x17   : > { %v204_v4 = vld [vmem:[#allocation3 + $0xa0] sm:$0xff]  ;;  %v241_v17 = vld [vmem:[#allocation3 + $0x28] sm:$0xff]  ;;  %v312_v49 = vld [vmem:[#allocation3 + $0x50] sm:$0xff]  ;;  %332 = vmatpush.msra.mxu2 %v313_v48 }
  0x18   : > { %220 = vmatpush.msra.mxu0 %v205_v3  ;;  %v203_v5 = vld [vmem:[#allocation3 + $0x80] sm:$0xff]  ;;  %261 = vmatpush.msra.mxu1 %v242_v16  ;;  %v240_v18 = vld [vmem:[#allocation3 + $0x8] sm:$0xff]  ;;  %v311_v50 = vld [vmem:[#allocation3 + $0x30] sm:$0xff] }
  0x19   : > { %v202_v6 = vld [vmem:[#allocation3 + $0x60] sm:$0xff]  ;;  %333 = vmatpush.msra.mxu2 %v312_v49  ;;  %v310_v51 = vld [vmem:[#allocation3 + $0x10] sm:$0xff]  ;;  %v344_v57 = vld [vmem:[#allocation3 + $0x78] sm:$0xff] }
  0x1a   : > { %221 = vmatpush.msra.mxu0 %v204_v4  ;;  %v201_v7 = vld [vmem:[#allocation3 + $0x40] sm:$0xff]  ;;  %262 = vmatpush.msra.mxu1 %v241_v17  ;;  %v343_v59 = vld [vmem:[#allocation3 + $0x58] sm:$0xff] }
  0x1b   : > { %v190_v1 = vld [vmem:[#allocation2] sm:$0xff]  ;;  %v200_v8 = vld [vmem:[#allocation3 + $0x20] sm:$0xff]  ;;  %334 = vmatpush.msra.mxu2 %v311_v50  ;;  %361 = vmatpush.msra.mxu3 %v344_v57 }
  0x1c   : > { %194 = vrot.lane.b32.xlu0 %v190_v1, %s534_s4  ;;  %222 = vmatpush.msra.mxu0 %v203_v5  ;;  %v199_v9 = vld [vmem:[#allocation3] sm:$0xff]  ;;  %v342_v60 = vld [vmem:[#allocation3 + $0x38] sm:$0xff] }
  0x1d   : > { %v583_v10 = vld [vmem:[#allocation3 + $0x100] sm:$0xff]  ;;  %263 = vmatpush.msra.mxu1 %v240_v18  ;;  %335 = vmatpush.msra.mxu2 %v310_v51  ;;  %v341_v61 = vld [vmem:[#allocation3 + $0x18] sm:$0xff] }
  0x1e   : > { %223 = vmatpush.msra.mxu0 %v202_v6  ;;  %v234_v12 = vperm.slane %v583_v10, 2  ;;  %v231_v19 = vperm.slane %v583_v10, 0  ;;  %v244_v25 = vperm.slane %v583_v10, 1  ;;  %362 = vmatpush.msra.mxu3 %v343_v59  ;;  %v314_v62 = vperm.slane %v583_v10, 3 }
  0x1f   : > { %v345_v2 = vperm.slane %v583_v10, 4 }
  0x20   : > { %224 = vmatpush.msra.mxu0 %v201_v7  ;;  %363 = vmatpush.msra.mxu3 %v342_v60 }
  0x22   : > { %225 = vmatpush.msra.mxu0 %v200_v8  ;;  %364 = vmatpush.msra.mxu3 %v341_v61 }
  0x24   : > { %226 = vmatpush.msra.mxu0 %v199_v9  ;;  %236 = vrot.lane.b32.xlu0 %v234_v12, %s534_s4 }
  0x8e   : > { %v195_v14 = vpop.permute.xlu0 %194 }
  0x8f   : > { %v198_v15 = vsel %vm197_vm1, %v191_v13, %v195_v14 }
  0x90   : > { %452 = vmatmul.msk.f32.vlgmr.msra.gmra.mxu0 %vm207_vm2, %v198_v15 }
  0x96   : > { %v237_v20 = vpop.permute.xlu0 %236 }
 0x10d   : > { %v228_v21 = vpop.f32.mrf.mxu0 }
 0x10e   : > { %v232_v22 = vadd.f32 %v231_v19, %v228_v21  ;;  %v239_v23 = vadd.f32 %v237_v20, %v228_v21 }
 0x110   : > { %v233_v24 = vmax.f32 %v232_v22, 0.0  ;;  %269 = vrot.lane.b32.xlu1 %v239_v23, %s535_s5 }
 0x112   : > { %453 = vmatmul.msk.f32.vlgmr.msra.gmra.mxu1 %vm197_vm1, %v233_v24 }
 0x118   : > { %292 = vrot.lane.b32.xlu1 %v239_v23, %s534_s4 }
 0x182   : > { %v270_v28 = vpop.permute.xlu1 %269 }
 0x18a   : > { %v293_v42 = vpop.permute.xlu1 %292 }
 0x18f   : > { %v265_v26 = vpop.f32.mrf.mxu1 }
 0x190   : > { %v266_v27 = vadd.f32 %v265_v26, %v244_v25 }
 0x192   : > { %v272_v29 = vadd.f32 %v270_v28, %v266_v27 }
 0x194   : > { %v454_v30 = vmul.f32 -1.442695, %v272_v29 }
 0x196   : > { %483 = vpow2.f32 %v454_v30 }
 0x19c   : > { %v484_v31 = vpop.eup %483 }
 0x19d   : > { %v276_v32 = vadd.f32 1.0, %v484_v31 }
 0x19f   : > { %485 = vrcp.f32 %v276_v32  ;;  %v288_v36 = vand.u32 2147483648, %v276_v32  ;;  %v286_v38 = vand.u32 2147483647, %v276_v32  ;;  %vm282_vm4 = vweird.f32 %v276_v32 }
 0x1a1   : > { %v289_v40 = vor.u32 1.1754944e-38, %v288_v36  ;;  %vm287_vm6 = vcmp.eq.f32.partialorder %v286_v38, 8.507059e+37 }
 0x1a5   : > { %v486_v33 = vpop.eup %485 }
 0x1a6   : > { %v278_v34 = vmul.f32 %v486_v33, %v276_v32  ;;  %vm283_vm3 = vweird.f32 %v486_v33 }
 0x1a7   : > { %vm284_vm5 = vmor %vm282_vm4, %vm283_vm3 }
 0x1a8   : > { %v279_v35 = vsub.f32 1.0, %v278_v34 }
 0x1aa   : > { %v280_v37 = vmul.f32 %v486_v33, %v279_v35 }
 0x1ac   : > { %v281_v39 = vadd.f32 %v486_v33, %v280_v37 }
 0x1ae   : > { %v285_v41 = vsel %vm284_vm5, %v486_v33, %v281_v39 }
 0x1af   : > { %v290_v43 = vsel %vm287_vm6, %v289_v40, %v285_v41 }
 0x1b0   : > { %v295_v44 = vmul.f32 %v293_v42, %v290_v43  ;;  %v302_v52 = vsub.f32 1.0, %v290_v43  ;;  %v308_v54 = vmul.f32 %v290_v43, %v195_v14 }
 0x1b2   : > { %297 = vrot.lane.b32.xlu2 %v295_v44, %s536_s6 }
 0x20c   : > { %v298_v45 = vpop.permute.xlu2 %297 }
 0x20d   : > { %v300_v46 = vadd.f32 %v298_v45, %v266_v27 }
 0x20f   : > { %487 = vtanh.f32 %v300_v46 }
 0x215   : > { %v488_v47 = vpop.eup %487 }
 0x216   : > { %304 = vrot.lane.b32.xlu2 %v488_v47, %s535_s5 }
 0x270   : > { %v305_v53 = vpop.permute.xlu2 %304 }
 0x271   : > { %v307_v55 = vmul.f32 %v305_v53, %v302_v52 }
 0x273   : > { %v309_v56 = vadd.f32 %v308_v54, %v307_v55 }
 0x275   : > { %371 = vrot.lane.b32.xlu1 %v309_v56, %s536_s6  ;;  %316 = vrot.lane.b32.xlu0 %v309_v56, %s535_s5 }
 0x2e7   : > { %v317_v58 = vpop.permute.xlu0 %316  ;;  %v372_v5 = vpop.permute.xlu1 %371 }
 0x2e8   : > { %370 = vst.msk [vmem:[#allocation2] sm:$0xff] %vm197_vm1, %v317_v58  ;;  %455 = vmatmul.msk.f32.vlgmr.msra.gmra.mxu2 %vm197_vm1, %v317_v58 }
 0x36b   : > { %v337_v63 = vpop.f32.mrf.mxu2 }
 0x36c   : > { %v338_v0 = vadd.f32 %v337_v63, %v314_v62 }
 0x36e   : > { %v340_v1 = vmax.f32 %v338_v0, 0.0 }
 0x370   : > { %456 = vmatmul.msk.f32.vlgmr.msra.gmra.mxu3 %vm197_vm1, %v340_v1 }
 0x3f3   : > { %v366_v3 = vpop.f32.mrf.mxu3 }
 0x3f4   : > { %v367_v4 = vadd.f32 %v366_v3, %v345_v2 }
 0x3f6   : > { %v375_v6 = vsel %vm374_vm7, %v367_v4, %v372_v5 }
 0x3f7   : > { %376 = vst [vmem:[%s576_s28] sm:$0xff] %v375_v6 }
 0x3f8 PF: > { %s14_s12 = sadd.s32 1, %s529_s12  }
 0x3f9   : > { %p11_p8 = scmp.ge.s32.totalorder %s14_s12, 10  }
 0x3fb   :  { %13 = sbr.rel (!%p11_p8) target bundleno = 1 (0x1), region = 71 }
 0x400   :  { %396 = vsyncpa [#allocation4], 1 }
 0x401   :  { %398 = vsyncpa [#allocation4 + $0x1], 1 }

</bundles_post_ra>
